<compile_context>
chip_gen: v7x
topology: tpu7x:2x2x1
jax: 0.10.0
libtpu: 0.0.40
codegen_flags: <defaults>
</compile_context>

<pallas_src>
import math
import functools

import jax
import jax.numpy as jnp
from jax import lax
from jax.experimental import pallas as pl
from jax.experimental.pallas import tpu as pltpu


# MXU operand dtype (f32 accumulation is always kept).  Set to jnp.float32 for
# bit-closer f32 numerics; bf16 gives the 2-4x MXU throughput on v6e/v7x and
# halves operand DMA bytes.
MXU_DTYPE = jnp.bfloat16


# ----------------------------------------------------------------------------
# Tile helpers
# ----------------------------------------------------------------------------
def _pick_tile(size, target, align):
    """Largest tile <= target that divides `size`; full `size` if it is small.

    Guarantees the returned tile is either the full dimension or a multiple of
    `align` (8 for sublane dims, 128 for lane dims) so BlockSpecs are legal.
    """
    if size <= target:
        return size
    t = (target // align) * align
    while t >= align:
        if size % t == 0:
            return t
        t -= align
    return size  # fall back to the full (untiled) dimension


def _pick_group(n_seg, seg_len, head_dim, tq, tkv):
    """How many independent segments to batch per attention grid step."""
    bytes_per_seg = seg_len * head_dim * 4 * 3           # q + k + v (f32)
    target = max(1, (2 << 20) // max(bytes_per_seg, 1))  # ~2 MiB of q/k/v
    score_cap = max(1, (4 << 20) // (tq * tkv * 4))      # ~4 MiB of f32 scores
    target = max(1, min(target, score_cap))
    g = min(n_seg, target)
    while n_seg % g != 0:
        g -= 1
    return g


# ----------------------------------------------------------------------------
# Tiled, batched linear:  y[p] = x[p] @ w[p] + b[p]
# ----------------------------------------------------------------------------
def _linear_kernel(x_ref, w_ref, b_ref, o_ref, acc_ref):
    k = pl.program_id(3)

    @pl.when(k == 0)
    def _():
        acc_ref[...] = jnp.zeros_like(acc_ref)

    acc_ref[...] += jnp.dot(
        x_ref[...].astype(MXU_DTYPE),
        w_ref[...].astype(MXU_DTYPE),
        preferred_element_type=jnp.float32,
    )

    @pl.when(k == pl.num_programs(3) - 1)
    def _():
        o_ref[...] = (acc_ref[...] + b_ref[...].astype(jnp.float32)).astype(o_ref.dtype)


def batched_linear(x, w, b, *, tm_target=256, tn_target=256, tk_target=512):
    """x: (P, M, Din), w: (P, Din, Dout), b: (P, Dout) -> (P, M, Dout)."""
    P, M, Din = x.shape
    Dout = w.shape[2]

    tm = _pick_tile(M, tm_target, 8)
    tn = _pick_tile(Dout, tn_target, 128)
    tk = _pick_tile(Din, tk_target, 128)

    b3 = b.reshape(P, 1, Dout)
    grid = (P, M // tm, Dout // tn, Din // tk)

    return pl.pallas_call(
        _linear_kernel,
        out_shape=jax.ShapeDtypeStruct((P, M, Dout), jnp.float32),
        grid=grid,
        in_specs=[
            pl.BlockSpec((None, tm, tk), lambda p, i, j, k: (p, i, k)),
            pl.BlockSpec((None, tk, tn), lambda p, i, j, k: (p, k, j)),
            pl.BlockSpec((None, 1, tn), lambda p, i, j, k: (p, 0, j)),
        ],
        out_specs=pl.BlockSpec((None, tm, tn), lambda p, i, j, k: (p, i, j)),
        scratch_shapes=[pltpu.VMEM((tm, tn), jnp.float32)],
        compiler_params=pltpu.CompilerParams(
            dimension_semantics=("parallel", "parallel", "parallel", "arbitrary")
        ),
    )(x, w, b3)


# ----------------------------------------------------------------------------
# Flash-style causal attention over G independent segments per grid step
# ----------------------------------------------------------------------------
def _flash_attn_kernel(q_ref, k_ref, v_ref, o_ref, m_sc, l_sc, acc_sc, *, scale):
    qi = pl.program_id(1)
    ki = pl.program_id(2)
    nk = pl.num_programs(2)

    tq = q_ref.shape[1]
    tkv = k_ref.shape[1]
    q_start = qi * tq
    k_start = ki * tkv

    @pl.when(ki == 0)
    def _():
        m_sc[...] = jnp.full_like(m_sc, -jnp.inf)
        l_sc[...] = jnp.zeros_like(l_sc)
        acc_sc[...] = jnp.zeros_like(acc_sc)

    # Causal block-skip: KV blocks strictly above the diagonal contribute nothing.
    @pl.when(k_start <= q_start + tq - 1)
    def _():
        # Fold the 1/sqrt(d) scale into Q once (O(tq*d)), cast operands for MXU.
        q = (q_ref[...] * scale).astype(MXU_DTYPE)
        k = k_ref[...].astype(MXU_DTYPE)
        s = jnp.einsum("gqd,gkd->gqk", q, k,
                       preferred_element_type=jnp.float32)  # (G, tq, tkv) f32

        # Causal mask (f32 math; every query row keeps its diagonal -> no NaN rows).
        row = q_start + lax.broadcasted_iota(jnp.int32, (tq, tkv), 0)
        col = k_start + lax.broadcasted_iota(jnp.int32, (tq, tkv), 1)
        s = jnp.where((col <= row)[None], s, -jnp.inf)

        m_prev = m_sc[...]
        m_new = jnp.maximum(m_prev, s.max(-1, keepdims=True))
        alpha = jnp.exp(m_prev - m_new)
        p = jnp.exp(s - m_new)
        l_sc[...] = alpha * l_sc[...] + p.sum(-1, keepdims=True)
        acc_sc[...] = alpha * acc_sc[...] + jnp.einsum(
            "gqk,gkd->gqd", p.astype(MXU_DTYPE), v_ref[...].astype(MXU_DTYPE),
            preferred_element_type=jnp.float32,
        )
        m_sc[...] = m_new

    @pl.when(ki == nk - 1)
    def _():
        o_ref[...] = (
            acc_sc[...] * pl.reciprocal(l_sc[...], approx=True)
        ).astype(o_ref.dtype)


def causal_attention(q, k, v):
    """q, k, v: (N, S, d). Independent causal softmax attention per leading index."""
    N, S, d = q.shape
    scale = 1.0 / math.sqrt(d)

    tq = _pick_tile(S, 512, 8)
    tkv = _pick_tile(S, 512, 8)
    G = _pick_group(N, S, d, tq, tkv)

    grid = (N // G, S // tq, S // tkv)
    kern = functools.partial(_flash_attn_kernel, scale=scale)

    return pl.pallas_call(
        kern,
        out_shape=jax.ShapeDtypeStruct((N, S, d), jnp.float32),
        grid=grid,
        in_specs=[
            pl.BlockSpec((G, tq, d), lambda g, qi, ki: (g, qi, 0)),
            pl.BlockSpec((G, tkv, d), lambda g, qi, ki: (g, ki, 0)),
            pl.BlockSpec((G, tkv, d), lambda g, qi, ki: (g, ki, 0)),
        ],
        out_specs=pl.BlockSpec((G, tq, d), lambda g, qi, ki: (g, qi, 0)),
        scratch_shapes=[
            pltpu.VMEM((G, tq, 1), jnp.float32),   # running max
            pltpu.VMEM((G, tq, 1), jnp.float32),   # running denom
            pltpu.VMEM((G, tq, d), jnp.float32),   # running numerator
        ],
        compiler_params=pltpu.CompilerParams(
            dimension_semantics=("parallel", "parallel", "arbitrary")
        ),
    )(q, k, v)


# ----------------------------------------------------------------------------
# DilatedAttention / MultiHeadDilatedAttention (JAX glue around the kernels)
# ----------------------------------------------------------------------------
def dilated_attention(Q, K, V, segment_lengths, dilated_rates):
    """Q, K, V: (B, n, T, d). Returns (B, n, T, d)."""
    B, n, T, d = Q.shape
    out = jnp.zeros_like(Q)
    head_ids = jnp.arange(n)[:, None]  # (n, 1)

    for S, r in zip(segment_lengths, dilated_rates):
        L = T // S
        Ld = L // r
        # (B, n, L, S, d)
        Q5 = Q.reshape(B, n, L, S, d)
        K5 = K.reshape(B, n, L, S, d)
        V5 = V.reshape(B, n, L, S, d)

        # per-head segment indices: idx[h, j] = (h % r) + r * j
        idx = (jnp.arange(n)[:, None] % r) + r * jnp.arange(Ld)[None, :]  # (n, Ld)

        # gather -> (B, n, Ld, S, d)
        Qo = Q5[:, head_ids, idx]
        Ko = K5[:, head_ids, idx]
        Vo = V5[:, head_ids, idx]

        # flatten to independent causal attention problems: (B*n*Ld, S, d)
        qf = Qo.reshape(B * n * Ld, S, d)
        kf = Ko.reshape(B * n * Ld, S, d)
        vf = Vo.reshape(B * n * Ld, S, d)

        xf = causal_attention(qf, kf, vf)          # (B*n*Ld, S, d)
        x = xf.reshape(B, n, Ld, S, d)

        # scatter-add back into the full (B, n, L, S, d) output
        out5 = out.reshape(B, n, L, S, d)
        out5 = out5.at[:, head_ids, idx].add(x)
        out = out5.reshape(B, n, T, d)

    # Matches the reference: uniform division by the number of configs.
    return out / float(len(dilated_rates))


def multi_head_dilated_attention(params, Q, K, V, n_heads,
                                 segment_lengths, dilated_rates):
    """Q, K, V: (B, T, dim). Returns (B, T, dim)."""
    B, T, dim = Q.shape
    d = dim // n_heads

    # Fused q/k/v projection: one pallas_call over a leading projection axis.
    x3 = jnp.stack(
        [Q.reshape(B * T, dim), K.reshape(B * T, dim), V.reshape(B * T, dim)], axis=0)
    w3 = jnp.stack([params["wq"], params["wk"], params["wv"]], axis=0)
    b3 = jnp.stack([params["bq"], params["bk"], params["bv"]], axis=0)
    qkv = batched_linear(x3, w3, b3)               # (3, B*T, dim)

    # (B, T, n, d) -> (B, n, T, d)
    q = qkv[0].reshape(B, T, n_heads, d).transpose(0, 2, 1, 3)
    k = qkv[1].reshape(B, T, n_heads, d).transpose(0, 2, 1, 3)
    v = qkv[2].reshape(B, T, n_heads, d).transpose(0, 2, 1, 3)

    x = dilated_attention(q, k, v, segment_lengths, dilated_rates)  # (B, n, T, d)

    # (B, n, T, d) -> (B*T, n*d)
    x = x.transpose(0, 2, 1, 3).reshape(B * T, dim)
    y = batched_linear(x[None], params["wo"][None], params["bo"][None])[0]
    return y.reshape(B, T, dim)


# ----------------------------------------------------------------------------
# Driver
# ----------------------------------------------------------------------------
if __name__ == "__main__":
    # Small shapes consistent with the module.
    B, T, dim, n_heads = 2, 16, 32, 4
    segment_lengths = [4, 8]
    dilated_rates = [1, 2]

    key = jax.random.PRNGKey(0)
    ks = jax.random.split(key, 8)

    def init_w(k):
        return (0.02 * jax.random.normal(k, (dim, dim))).astype(jnp.float32)

    params = {
        "wq": init_w(ks[0]), "bq": jnp.zeros((dim,), jnp.float32),
        "wk": init_w(ks[1]), "bk": jnp.zeros((dim,), jnp.float32),
        "wv": init_w(ks[2]), "bv": jnp.zeros((dim,), jnp.float32),
        "wo": init_w(ks[3]), "bo": jnp.zeros((dim,), jnp.float32),
    }

    Q_in = jax.random.normal(ks[4], (B, T, dim), dtype=jnp.float32)
    K_in = jax.random.normal(ks[5], (B, T, dim), dtype=jnp.float32)
    V_in = jax.random.normal(ks[6], (B, T, dim), dtype=jnp.float32)

    out = multi_head_dilated_attention(
        params, Q_in, K_in, V_in, n_heads, segment_lengths, dilated_rates
    )
    jax.block_until_ready(out)
    assert out.shape == (B, T, dim)
    print("KERNEL_OK")
</pallas_src>

<mosaic_0001>
module attributes {stable_mosaic.version = 11 : i64} {
  func.func @_linear_kernel(%arg0: i32, %arg1: i32, %arg2: i32, %arg3: i32, %arg4: memref<1x32x32xf32, #tpu.memory_space<vmem>>, %arg5: memref<1x32x32xf32, #tpu.memory_space<vmem>>, %arg6: memref<1x1x32xf32, #tpu.memory_space<vmem>>, %arg7: memref<1x32x32xf32, #tpu.memory_space<vmem>>, %arg8: memref<32x32xf32, #tpu.memory_space<vmem>>) attributes {dimension_semantics = [#tpu.dimension_semantics<parallel>, #tpu.dimension_semantics<parallel>, #tpu.dimension_semantics<parallel>, #tpu.dimension_semantics<arbitrary>], iteration_bounds = array<i64: 3, 1, 1, 1>, scalar_prefetch = 0 : i64, scratch_operands = 1 : i64, tpu.core_type = #tpu.core_type<tc>, window_params = [{transform_indices = @transform_0, window_bounds = array<i64: 1, 32, 32>}, {transform_indices = @transform_1, window_bounds = array<i64: 1, 32, 32>}, {transform_indices = @transform_2, window_bounds = array<i64: 1, 1, 32>}, {transform_indices = @transform_3, window_bounds = array<i64: 1, 32, 32>}]} {
    %c0_i32 = arith.constant 0 : i32
    %0 = arith.cmpi eq, %arg3, %c0_i32 : i32
    %1 = arith.extui %0 : i1 to i32
    %c0_i32_0 = arith.constant 0 : i32
    %2 = arith.cmpi ne, %1, %c0_i32_0 : i32
    scf.if %2 {
      %cst_12 = arith.constant 0.000000e+00 : f32
      %16 = vector.broadcast %cst_12 : f32 to vector<32x32xf32>
      %c0_13 = arith.constant 0 : index
      %c0_14 = arith.constant 0 : index
      %17 = vector.load %arg8[%c0_13, %c0_14] : memref<32x32xf32, #tpu.memory_space<vmem>>, vector<32x32xf32>
      tpu.vector_store %arg8[%c0_13, %c0_14], %16 {strides = array<i32>} : memref<32x32xf32, #tpu.memory_space<vmem>>, vector<32x32xf32>,
    } else {
    }
    %c0 = arith.constant 0 : index
    %c0_1 = arith.constant 0 : index
    %3 = vector.load %arg8[%c0, %c0_1] : memref<32x32xf32, #tpu.memory_space<vmem>>, vector<32x32xf32>
    %c0_2 = arith.constant 0 : index
    %c0_3 = arith.constant 0 : index
    %c0_4 = arith.constant 0 : index
    %4 = vector.load %arg4[%c0_2, %c0_3, %c0_4] : memref<1x32x32xf32, #tpu.memory_space<vmem>>, vector<1x32x32xf32>
    %5 = vector.shape_cast %4 : vector<1x32x32xf32> to vector<32x32xf32>
    %6 = arith.truncf %5 : vector<32x32xf32> to vector<32x32xbf16>
    %c0_5 = arith.constant 0 : index
    %c0_6 = arith.constant 0 : index
    %c0_7 = arith.constant 0 : index
    %7 = vector.load %arg5[%c0_5, %c0_6, %c0_7] : memref<1x32x32xf32, #tpu.memory_space<vmem>>, vector<1x32x32xf32>
    %8 = vector.shape_cast %7 : vector<1x32x32xf32> to vector<32x32xf32>
    %9 = arith.truncf %8 : vector<32x32xf32> to vector<32x32xbf16>
    %cst = arith.constant dense<0.000000e+00> : vector<32x32xf32>
    %10 = tpu.matmul %6, %9, %cst {dimension_numbers = #tpu.dot_dimension_numbers<[1], [0], [0], [1], [0, 0, 1, 1], [], []>} : vector<32x32xbf16>, vector<32x32xbf16>, vector<32x32xf32> -> vector<32x32xf32>
    %11 = arith.addf %3, %10 : vector<32x32xf32>
    %c0_8 = arith.constant 0 : index
    %c0_9 = arith.constant 0 : index
    %12 = vector.load %arg8[%c0_8, %c0_9] : memref<32x32xf32, #tpu.memory_space<vmem>>, vector<32x32xf32>
    tpu.vector_store %arg8[%c0_8, %c0_9], %11 {strides = array<i32>} : memref<32x32xf32, #tpu.memory_space<vmem>>, vector<32x32xf32>,
    %c0_i32_10 = arith.constant 0 : i32
    %13 = arith.cmpi eq, %arg3, %c0_i32_10 : i32
    %14 = arith.extui %13 : i1 to i32
    %c0_i32_11 = arith.constant 0 : i32
    %15 = arith.cmpi ne, %14, %c0_i32_11 : i32
    scf.if %15 {
      %c0_12 = arith.constant 0 : index
      %c0_13 = arith.constant 0 : index
      %16 = vector.load %arg8[%c0_12, %c0_13] : memref<32x32xf32, #tpu.memory_space<vmem>>, vector<32x32xf32>
      %c0_14 = arith.constant 0 : index
      %c0_15 = arith.constant 0 : index
      %c0_16 = arith.constant 0 : index
      %17 = vector.load %arg6[%c0_14, %c0_15, %c0_16] : memref<1x1x32xf32, #tpu.memory_space<vmem>>, vector<1x1x32xf32>
      %18 = vector.shape_cast %17 : vector<1x1x32xf32> to vector<1x32xf32>
      %19 = vector.broadcast %18 : vector<1x32xf32> to vector<32x32xf32>
      %20 = arith.addf %16, %19 : vector<32x32xf32>
      %c0_17 = arith.constant 0 : index
      %c0_18 = arith.constant 0 : index
      %c0_19 = arith.constant 0 : index
      %21 = vector.load %arg7[%c0_17, %c0_18, %c0_19] : memref<1x32x32xf32, #tpu.memory_space<vmem>>, vector<1x32x32xf32>
      %22 = vector.shape_cast %21 : vector<1x32x32xf32> to vector<32x32xf32>
      %23 = vector.shape_cast %20 : vector<32x32xf32> to vector<1x32x32xf32>
      tpu.vector_store %arg7[%c0_17, %c0_18, %c0_19], %23 {strides = array<i32>} : memref<1x32x32xf32, #tpu.memory_space<vmem>>, vector<1x32x32xf32>,
    } else {
    }
    return
  }
  func.func @transform_0(%arg0: i32, %arg1: i32, %arg2: i32, %arg3: i32) -> (i32, i32, i32) {
    %c0_i32 = arith.constant 0 : i32
    return %arg0, %arg1, %arg3 : i32, i32, i32
  }
  func.func @transform_1(%arg0: i32, %arg1: i32, %arg2: i32, %arg3: i32) -> (i32, i32, i32) {
    %c0_i32 = arith.constant 0 : i32
    return %arg0, %arg3, %arg2 : i32, i32, i32
  }
  func.func @transform_2(%arg0: i32, %arg1: i32, %arg2: i32, %arg3: i32) -> (i32, i32, i32) {
    %c0_i32 = arith.constant 0 : i32
    %c0_i32_0 = arith.constant 0 : i32
    return %arg0, %c0_i32, %arg2 : i32, i32, i32
  }
  func.func @transform_3(%arg0: i32, %arg1: i32, %arg2: i32, %arg3: i32) -> (i32, i32, i32) {
    %c0_i32 = arith.constant 0 : i32
    return %arg0, %arg1, %arg2 : i32, i32, i32
  }
}

</mosaic_0001>

<bundles_post_ra>
// kernel: tpu_custom_call.1
= control target key start
LH: loop header
LB: loop body
LE: loop exit
PB: predicated region body
PF: predicated region fallthrough
CT: control target
= control target key end

     0   :  { %8 = vsyncpa [#allocation4], 0  ;;  %s1107_s0 = inlined_call_operand.hbm [shape: f32[3,32,32], index: 0, kind: input, shape index: {}]   ;;  %s1108_s1 = inlined_call_operand.hbm [shape: f32[3,32,32], index: 1, kind: input, shape index: {}]   ;;  %s1109_s2 = inlined_call_operand.vmem [shape: f32[3,1,32], index: 2, kind: input, shape index: {}]   ;;  %s1110_s3 = inlined_call_operand.hbm [shape: f32[3,32,32], index: 3, kind: output, shape index: {}]  }
   0x1   :  { %10 = vsyncpa [#allocation4 + $0x1], 0 }
   0x2   :  { %11 = vsyncpa [#allocation7], 0 }
   0x3   :  { %13 = vsyncpa [#allocation7 + $0x1], 0 }
   0x4   :  { %14 = vsyncpa [#allocation5], 0 }
   0x5   :  { %16 = vsyncpa [#allocation5 + $0x1], 0  ;;  %s849_s12 = smov 0   ;;  %s851_s13 = smov 0  }
   0x6   :  { %s853_s14 = smov 0   ;;  %s855_s15 = smov 0  }
   0x7   :  { %s857_s16 = smov 0   ;;  %s859_s17 = smov 0  }
   0x8 LB: > { %s564_s18 = sadd.s32 4294967295, %s819_s17   ;;  %s565_s19 = sadd.s32 4294967294, %s819_s17   ;;  %s819_s17 = sphi %s859_s17, %s22_s17   ;;  %s815_s16 = sphi %s857_s16, %s1127_s16   ;;  %s811_s15 = sphi %s855_s15, %s1126_s15   ;;  %s807_s14 = sphi %s853_s14, %s1125_s14   ;;  %s803_s13 = sphi %s851_s13, %s1124_s13   ;;  %s799_s12 = sphi %s849_s12, %s1123_s12  }
   0x9   : > { %s48_s20 = sadd.s32 1, %s815_s16  ;;  %s59_s21 = sadd.s32 1, %s807_s14 }
   0xa   : > { %p50_p0 = scmp.ge.s32.totalorder %s48_s20, 3  ;;  %p66_p1 = scmp.ne.s32.totalorder %s807_s14, %s803_s13 }
   0xb   : > { %p67_p2 = scmp.eq.s32.totalorder %s819_s17, 0  ;;  %p72_p3 = scmp.ne.s32.totalorder %s803_s13, %s799_s12 }
   0xc   : > { %s1129_s20 = smov (%p50_p0, %s48_s20), 0  ;;  %p73_p5 = scmp.eq.s32.totalorder %s564_s18, 0 }
   0xd   : > { %p890_p4 = por %p67_p2, %p66_p1  ;;  %s52_s23 = ssub.s32 %s815_s16, %s1129_s20 }
   0xe   : > { %p158_p6 = scmp.eq.s32.totalorder %s564_s18, 2  ;;  %p57_p7 = scmp.eq.s32.totalorder %s52_s23, 0 }
   0xf   : > { %p896_p8 = por %p73_p5, %p72_p3  ;;  %p164_p10 = scmp.eq.s32.totalorder %s565_s19, 2 }
  0x10   : > { %p900_p9 = por %p158_p6, %p66_p1  ;;  %p618_p12 = scmp.lt.s32.totalorder %s819_s17, 3 }
  0x11   : > { %s1114_s24 = scalar_select %p896_p8, 1, 0 }
  0x12   : > { %s1115_s25 = scalar_select %p900_p9, 1, 0 }
  0x13   : > { %s905_s26 = scalar_select %p57_p7, %s807_s14, %s59_s21  }
  0x14   : > { %p907_p11 = por %p164_p10, %p72_p3  ;;  %s913_s28 = sand.u32 1, %s807_s14  }
  0x15   : > { %s568_s29 = sshll.u32 %s913_s28, 5  ;;  %s586_s30 = sshll.u32 %s815_s16, 9 }
  0x16   : > { %s1116_s27 = scalar_select %p907_p11, 1, 0 }
  0x17   : > { %s922_s6 = scalar_lea.hbm %s1107_s0, %s586_s30  ;;  %s188_s7 = scalar_lea.vmem [#allocation3], %s568_s29 }
  0x18   : > { %s198_s8 = sshll.u32 %s188_s7, 4  ;;  %p930_p13 = pnand %p618_p12, %p890_p4  ;;  %s926_s8 = int_to_ptr.vmem [resolvable:$true] %s198_s8 }
  0x19   : > { %s185_s10 = scalar_lea.sflag [#allocation4], %s913_s28  ;;  %s673_s11 = scalar_lea.hbm %s922_s6, 512 }
  0x1a   : > { %p674_p1 = scmp.ne.s32.totalorder %s922_s6, %s673_s11  ;;  %p675_p2 = pneg %p930_p13 }
  0x1b   : > { %s678_s21 = scalar_lea.hbm %s1107_s0, 1536  ;;  %p679_p4 = scmp.lt.u32.totalorder %s922_s6, %s1107_s0 }
  0x1c   : > { %p676_p3 = pnand %p675_p2, %p674_p1  ;;  %p680_p6 = scmp.lt.u32.totalorder %s678_s21, %s673_s11 }
  0x1d   : > { %p682_p10 = scmp.lt.u32.totalorder %s673_s11, %s922_s6 }
  0x1e   : > { %p677_p5 = pneg %p676_p3  ;;  %p681_p7 = por %p680_p6, %p679_p4 }
  0x20   : > { %p683_p12 = por %p682_p10, %p681_p7 }
  0x22   : > { %p684_p0 = pnand %p683_p12, %p677_p5 }
  0x24   : > { %687 = shalt.err (!%p684_p0)
}
  0x25   : > { %s688_s4 = scalar_lea.vmem %s926_s8, 512  ;;  %s821_s5 = smov [#allocation3]  }
  0x26   : > { %p689_p1 = scmp.ne.s32.totalorder %s926_s8, %s688_s4  ;;  %s693_s7 = sshll.u32 %s821_s5, 4  ;;  %s694_s7 = int_to_ptr.vmem [resolvable:$false] %s693_s7 }
  0x27   : > { %s695_s18 = scalar_lea.vmem %s694_s7, 1024  ;;  %p696_p9 = scmp.lt.s32.totalorder %s926_s8, %s694_s7 }
  0x28   : > { %p691_p3 = pnand %p689_p1, %p675_p2  ;;  %p697_p4 = scmp.lt.s32.totalorder %s695_s18, %s688_s4 }
  0x2a   : > { %p692_p11 = pneg %p691_p3  ;;  %p698_p6 = por %p697_p4, %p696_p9 }
  0x2c   : > { %p699_p7 = pnand %p698_p6, %p692_p11 }
  0x2e   : > { %702 = shalt.err (!%p699_p7)
}
  0x2f   : > { %s822_s11 = smov 128   ;;  %s823_s19 = smov 8  }
  0x30   : > { %610 = dma.hbm_to_vmem [thread:$0]  (!%p930_p13), %s922_s6, 512, %s926_s8, %s185_s10, %s822_s11, %s822_s11, %s823_s19  }
  0x31   : > { %p239_p9 = scmp.lt.s32.totalorder %s819_s17, 4  ;;  %s972_s23 = scalar_lea.hbm %s1108_s1, %s586_s30 }
  0x32   : > { %p1118_p11 = scmp.ge.s32.totalorder %s819_s17, 1  ;;  %s212_s5 = scalar_lea.vmem [#allocation6], %s568_s29 }
  0x33   : > { %s222_s7 = sshll.u32 %s212_s5, 4  ;;  %s209_s6 = scalar_lea.sflag [#allocation7], %s913_s28  ;;  %s982_s7 = int_to_ptr.vmem [resolvable:$true] %s222_s7 }
  0x34   : > { %p976_p0 = pnand %p1118_p11, %p239_p9  ;;  %s703_s8 = scalar_lea.hbm %s972_s23, 512 }
  0x35   : > { %p704_p5 = scmp.ne.s32.totalorder %s972_s23, %s703_s8  ;;  %s708_s18 = scalar_lea.hbm %s1108_s1, 1536 }
  0x36   : > { %p709_p1 = scmp.lt.u32.totalorder %s972_s23, %s1108_s1  ;;  %p710_p3 = scmp.lt.u32.totalorder %s708_s18, %s703_s8 }
  0x37   : > { %p706_p10 = pnand %p704_p5, %p675_p2  ;;  %p712_p6 = scmp.lt.u32.totalorder %s703_s8, %s972_s23 }
  0x38   : > { %p711_p4 = por %p710_p3, %p709_p1 }
  0x39   : > { %p707_p12 = pneg %p706_p10 }
  0x3a   : > { %p713_p7 = por %p712_p6, %p711_p4 }
  0x3c   : > { %p714_p9 = pnand %p713_p7, %p707_p12 }
  0x3e   : > { %717 = shalt.err (!%p714_p9)
}
  0x3f   : > { %s718_s29 = scalar_lea.vmem %s982_s7, 512  ;;  %s824_s5 = smov [#allocation6]  }
  0x40   : > { %p719_p11 = scmp.ne.s32.totalorder %s982_s7, %s718_s29  ;;  %s723_s30 = sshll.u32 %s824_s5, 4  ;;  %s724_s30 = int_to_ptr.vmem [resolvable:$false] %s723_s30 }
  0x41   : > { %s725_s10 = scalar_lea.vmem %s724_s30, 1024  ;;  %p726_p8 = scmp.lt.s32.totalorder %s982_s7, %s724_s30 }
  0x42   : > { %p721_p5 = pnand %p719_p11, %p675_p2  ;;  %p727_p1 = scmp.lt.s32.totalorder %s725_s10, %s718_s29 }
  0x44   : > { %p722_p10 = pneg %p721_p5  ;;  %p728_p3 = por %p727_p1, %p726_p8 }
  0x46   : > { %p729_p4 = pnand %p728_p3, %p722_p10 }
  0x48   : > { %732 = shalt.err (!%p729_p4)
}
  0x49   : > { %613 = dma.hbm_to_vmem [thread:$0]  (!%p930_p13), %s972_s23, 512, %s982_s7, %s209_s6, %s822_s11, %s822_s11, %s823_s19  }
  0x4a   : > { %243 = sbr.rel (%p976_p0) target bundleno = 337 (0x151), region = 32  ;;  %s1016_s8 = sand.u32 (!%p976_p0), 1, %s803_s13  }
  0x4b   : > { %s1019_s18 = sshll.u32 (!%p976_p0), %s1016_s8, 5  ;;  %s246_s9 = scalar_lea.sflag (!%p976_p0), [#allocation4], %s1016_s8 }
  0x4c   : > { %s249_s21 = scalar_lea.vmem (!%p976_p0), [#allocation3], %s1019_s18  ;;  %p1120_p8 = scmp.ne.s32.totalorder (!%p976_p0), %s1114_s24, 0 }
  0x51   : > { %786 = dma.done.wait (%p1120_p8), %s246_s9, 512  }
  0x52   : > { %788 = vsyncadd (%p1120_p8), %s246_s9, 4294966784  ;;  %s255_s28 = scalar_lea.sflag [#allocation7], %s1016_s8  ;;  %s258_s11 = scalar_lea.vmem [#allocation6], %s1019_s18 }
  0x53   : > { %790 = dma.done.wait (%p1120_p8), %s255_s28, 512  }
  0x54   : > { %792 = vsyncadd (%p1120_p8), %s255_s28, 4294966784  ;;  %vm306_vm0 = vcmask 261120   ;;  %v825_v0 = vmov 0.0   ;;  %v321_v1 = vld [vmem:[%s258_s11] sm:$0xff]  ;;  %v322_v2 = vld [vmem:[%s258_s11 + $0x8] sm:$0xff]  ;;  %p294_p13 = scmp.lt.s32.totalorder %s811_s15, 2 }
  0x55   : > { %309 = vst.msk [vmem:[#allocation2 + $0x10] sm:$0xff] %vm306_vm0, %v825_v0  ;;  %307 = vst.msk [vmem:[#allocation2] sm:$0xff] %vm306_vm0, %v825_v0  ;;  %v323_v3 = vld [vmem:[%s258_s11 + $0x10] sm:$0xff]  ;;  %v325_v4 = vpack.c.bf16 %v322_v2, %v321_v1  ;;  %v324_v5 = vld [vmem:[%s258_s11 + $0x18] sm:$0xff]  ;;  %s588_s7 = sshll.u32 %s811_s15, 9  ;;  %s291_s6 = scalar_lea.vmem [#allocation8], %s1019_s18 }
  0x56   : > { %308 = vst.msk [vmem:[#allocation2 + $0x8] sm:$0xff] %vm306_vm0, %v825_v0  ;;  %310 = vst.msk [vmem:[#allocation2 + $0x18] sm:$0xff] %vm306_vm0, %v825_v0  ;;  %v315_v6 = vld [vmem:[%s249_s21] sm:$0xff]  ;;  %v316_v7 = vld [vmem:[%s249_s21 + $0x8] sm:$0xff]  ;;  %v326_v8 = vpack.c.bf16 %v324_v5, %v323_v3  ;;  %s295_s24 = scalar_select %p294_p13, %s811_s15, 2 }
  0x57   : > { %v319_v9 = vpack.c.bf16 %v316_v7, %v315_v6  ;;  %593 = vmatprep.subr.bf16.mxu0 %v325_v4  ;;  %v317_v10 = vld [vmem:[%s249_s21 + $0x10] sm:$0xff]  ;;  %v318_v11 = vld [vmem:[%s249_s21 + $0x18] sm:$0xff]  ;;  %s430_s22 = sshll.u32 %s291_s6, 4  ;;  %s1054_s30 = scalar_lea.hbm %s1110_s3, %s588_s7  ;;  %s1056_s22 = int_to_ptr.vmem [resolvable:$true] %s430_s22 }
  0x58   : > { %594 = vmatpush3.bf16.msra.mxu0 %v325_v4  ;;  %v320_v12 = vpack.c.bf16 %v318_v11, %v317_v10  ;;  %s299_s4 = scalar_lea.vmem %s1109_s2, %s295_s24  ;;  %s414_s15 = scalar_lea.sflag [#allocation5], %s1016_s8 }
  0x59   : > { %597 = vmatprep.mubr.msk.bf16.mxu0 %vm306_vm0, %v319_v9  ;;  %595 = vmatprep.subr.bf16.mxu0 %v326_v8  ;;  %v580_v25 = vld [vmem:[%s299_s4] ss:$0 sm:$0xff]  ;;  %s733_s10 = scalar_lea.vmem %s1056_s22, 512  ;;  %p1121_p0 = scmp.ne.s32.totalorder %s1115_s25, 0 }
  0x5a   : > { %p734_p2 = scmp.ne.s32.totalorder %s1056_s22, %s733_s10  ;;  %s826_s18 = smov [#allocation8]  }
  0x5b   : > { %s737_s9 = sshll.u32 %s826_s18, 4  ;;  %s738_s9 = int_to_ptr.vmem [resolvable:$false] %s737_s9 }
  0x5c   : > { %596 = vmatpush3.bf16.msra.mxu0 %v326_v8  ;;  %v313_v13 = vld [vmem:[#allocation2 + $0x10] sm:$0xff]  ;;  %v311_v14 = vld [vmem:[#allocation2] sm:$0xff]  ;;  %p735_p12 = pnand %p734_p2, %p1121_p0  ;;  %s739_s21 = scalar_lea.vmem %s738_s9, 1024 }
  0x5d   : > { %v314_v16 = vld [vmem:[#allocation2 + $0x18] sm:$0xff]  ;;  %v312_v19 = vld [vmem:[#allocation2 + $0x8] sm:$0xff]  ;;  %p740_p7 = scmp.lt.s32.totalorder %s1056_s22, %s738_s9  ;;  %p741_p9 = scmp.lt.s32.totalorder %s739_s21, %s733_s10 }
  0x5e   : > { %p736_p6 = pneg %p735_p12 }
  0x5f   : > { %598 = vmatmul.mubr.msk.bf16.vlgmr.msra.gmra.mrb[0].mxu0 %vm306_vm0, %v320_v12  ;;  %p742_p11 = por %p741_p9, %p740_p7 }
  0x61   : > { %p743_p5 = pnand %p742_p11, %p736_p6 }
 0x132   : > { %v599_v15 = vpop.f32.mrb[0].mxu0 }
 0x133   : > { %v385_v17 = vadd.f32 %v599_v15, %v313_v13  ;;  %v368_v18 = vpop.f32.mrb[1].mxu0 }
 0x134   : > { %v383_v20 = vadd.f32 %v368_v18, %v311_v14  ;;  %v600_v21 = vpop.f32.mrb[2].mxu0 }
 0x135   : > { %389 = vst.msk [vmem:[#allocation2 + $0x10] sm:$0xff] %vm306_vm0, %v385_v17  ;;  %v386_v22 = vadd.f32 %v600_v21, %v314_v16  ;;  %v371_v23 = vpop.f32.mrb[3].mxu0 }
 0x136   : > { %387 = vst.msk [vmem:[#allocation2] sm:$0xff] %vm306_vm0, %v383_v20  ;;  %v384_v24 = vadd.f32 %v371_v23, %v312_v19 }
 0x137   : > { %390 = vst.msk [vmem:[#allocation2 + $0x18] sm:$0xff] %vm306_vm0, %v386_v22 }
 0x138   : > { %388 = vst.msk [vmem:[#allocation2 + $0x8] sm:$0xff] %vm306_vm0, %v384_v24 }
 0x13c   : > { %v396_v26 = vld [vmem:[#allocation2 + $0x10] sm:$0xff] }
 0x13d   : > { %v394_v27 = vld [vmem:[#allocation2] sm:$0xff]  ;;  %v407_v28 = vadd.f32 %v580_v25, %v396_v26 }
 0x13e   : > { %v397_v29 = vld [vmem:[#allocation2 + $0x18] sm:$0xff]  ;;  %v405_v30 = vadd.f32 %v580_v25, %v394_v27 }
 0x13f   : > { %v395_v31 = vld [vmem:[#allocation2 + $0x8] sm:$0xff]  ;;  %v408_v32 = vadd.f32 %v580_v25, %v397_v29  ;;  %411 = vst.msk [vmem:[%s291_s6 + $0x10] sm:$0xff] %vm306_vm0, %v407_v28 }
 0x140   : > { %v406_v33 = vadd.f32 %v580_v25, %v395_v31  ;;  %409 = vst.msk [vmem:[%s291_s6] sm:$0xff] %vm306_vm0, %v405_v30 }
 0x141   : > { %412 = vst.msk [vmem:[%s291_s6 + $0x18] sm:$0xff] %vm306_vm0, %v408_v32 }
 0x142   : > { %410 = vst.msk [vmem:[%s291_s6 + $0x8] sm:$0xff] %vm306_vm0, %v406_v33 }
 0x143   : > { %746 = shalt.err (!%p743_p5)
}
 0x144   : > { %s747_s28 = scalar_lea.hbm %s1054_s30, 512  ;;  %s751_s19 = scalar_lea.hbm %s1110_s3, 1536 }
 0x145   : > { %p748_p10 = scmp.ne.s32.totalorder %s1054_s30, %s747_s28  ;;  %p752_p4 = scmp.lt.u32.totalorder %s1054_s30, %s1110_s3 }
 0x146   : > { %p753_p8 = scmp.lt.u32.totalorder %s751_s19, %s747_s28  ;;  %p755_p2 = scmp.lt.u32.totalorder %s747_s28, %s1054_s30 }
 0x147   : > { %p749_p1 = pnand %p748_p10, %p1121_p0 }
 0x148   : > { %p754_p13 = por %p753_p8, %p752_p4 }
 0x149   : > { %p750_p3 = pneg %p749_p1 }
 0x14a   : > { %p756_p12 = por %p755_p2, %p754_p13 }
 0x14c   : > { %p757_p6 = pnand %p756_p12, %p750_p3 }
 0x14e   : > { %760 = shalt.err (!%p757_p6)
}
 0x14f   : > { %s827_s7 = smov 128   ;;  %s828_s6 = smov 8  }
 0x150   : > { %605 = dma.vmem_to_hbm [thread:$0]  (%p1121_p0), %s1056_s22, 512, %s1054_s30, %s414_s15, %s827_s7, %s827_s7, %s828_s6  }
 0x151 PF: > { %p619_p7 = scmp.ge.s32.totalorder %s819_s17, 2  ;;  %s445_s29 = sand.u32 1, %s799_s12  }
 0x152   : > { %p1122_p9 = scmp.ne.s32.totalorder %s1116_s27, 0  ;;  %s446_s5 = scalar_lea.sflag [#allocation5], %s445_s29 }
 0x154   : > { %p615_p11 = pnand %p619_p7, %p1122_p9 }
 0x156   : > { %794 = dma.done.wait (!%p615_p11), %s446_s5, 512  }
 0x157   : > { %796 = vsyncadd (!%p615_p11), %s446_s5, 4294966784  ;;  %s22_s17 = sadd.s32 1, %s819_s17   ;;  %s1123_s12 = smov %s803_s13 }
 0x158   : > { %p19_p5 = scmp.ge.s32.totalorder %s22_s17, 5   ;;  %s1124_s13 = smov %s807_s14 }
 0x159   : > { %s1125_s14 = smov %s905_s26  ;;  %s1126_s15 = smov %s815_s16 }
 0x15a   : > { %s1127_s16 = smov %s1129_s20  ;;  %21 = sbr.rel (!%p19_p5) target bundleno = 8 (0x8), region = 101 }
 0x161   :  { %451 = vsyncpa [#allocation4], 1 }
 0x162   :  { %453 = vsyncpa [#allocation4 + $0x1], 1 }
 0x163   :  { %454 = vsyncpa [#allocation7], 1 }
 0x164   :  { %456 = vsyncpa [#allocation7 + $0x1], 1 }
 0x165   :  { %457 = vsyncpa [#allocation5], 1 }
 0x166   :  { %459 = vsyncpa [#allocation5 + $0x1], 1 }

</bundles_post_ra>
